<compile_context>
chip_gen: v7x
topology: tpu7x:2x2x1
jax: 0.10.0
libtpu: 0.0.40
codegen_flags: <defaults>
</compile_context>

<pallas_src>
import jax
import jax.numpy as jnp
from jax.experimental import pallas as pl
from jax.experimental.pallas import tpu as pltpu

_LANE = 128
_SUBLANE = 8


def _round_up(a, m):
    return (a + m - 1) // m * m


def _lane_pad(n):
    return max(_round_up(n, _LANE), _LANE)


def _sub_pad(n):
    return max(_round_up(n, _SUBLANE), _SUBLANE)


def _vmem_capacity_bytes():
    """Per-core VMEM capacity; conservative 64 MiB (v7x) fallback."""
    try:
        info = pltpu.get_tpu_info()
        cap = int(getattr(info, "vmem_capacity_bytes", 0) or 0)
        if cap > 0:
            return cap
    except Exception:
        pass
    return 64 * 1024 * 1024


def _pick_tile_and_vmem(B, D, H, O, training, tile_b_cap):
    """Largest batch tile (multiple of 8, <= tile_b_cap) whose double-buffered
    blocks fit the VMEM budget; returns (TB, vmem_limit_bytes)."""
    cap = _vmem_capacity_bytes()
    budget = int(cap * 0.70)  # headroom for Mosaic scratch / semaphores

    # resident weights & biases (pipeline double-buffers them)
    weights = (
        _sub_pad(D) * _lane_pad(H)
        + _SUBLANE * _lane_pad(H)
        + _sub_pad(H) * _lane_pad(O)
        + _SUBLANE * _lane_pad(O)
    ) * 4 * 2
    # per batch-row streamed bytes: x plus (inference output | y), double-buffered
    per_row = (_lane_pad(D) + _lane_pad(O)) * 4 * 2
    fixed = weights + (2 * _SUBLANE * _LANE * 4 if training else 0)

    tb = min(tile_b_cap, _round_up(B, _SUBLANE))
    tb = max(_SUBLANE, _round_up(tb, _SUBLANE))
    while tb > _SUBLANE and fixed + tb * per_row > budget:
        tb = max(_SUBLANE, _round_up(tb // 2, _SUBLANE))

    need = fixed + tb * per_row
    vmem_limit = min(cap, max(need + (4 << 20), 16 << 20))
    return tb, vmem_limit


def _mlp_fwd_kernel(x_ref, w1_ref, b1_ref, w2_ref, b2_ref, o_ref):
    # hidden = sigmoid(x @ W1 + b1); pre = hidden @ W2 + b2
    h = jnp.dot(x_ref[...], w1_ref[...], preferred_element_type=jnp.float32)
    h = jax.nn.sigmoid(h + b1_ref[...])
    pre = jnp.dot(h, w2_ref[...], preferred_element_type=jnp.float32) + b2_ref[...]
    o_ref[...] = pre.astype(o_ref.dtype)


def _make_mlp_mse_partial_kernel(tb, true_b):
    """Fused forward + MSE partial sum.  Each grid step owns its own (1,8,128)
    output block (scalar partial at [0,0,0], zeros elsewhere), so the batch
    axis stays 'parallel' and the final reduction happens in the wrapper.
    Rows belonging to a ragged last tile are masked out."""

    def kernel(x_ref, y_ref, w1_ref, b1_ref, w2_ref, b2_ref, part_ref):
        i = pl.program_id(0)

        h = jnp.dot(x_ref[...], w1_ref[...], preferred_element_type=jnp.float32)
        h = jax.nn.sigmoid(h + b1_ref[...])
        pre = jnp.dot(h, w2_ref[...], preferred_element_type=jnp.float32) + b2_ref[...]

        diff = pre - y_ref[...]
        row = i * tb + jax.lax.broadcasted_iota(jnp.int32, diff.shape, 0)
        sq = jnp.where(row < true_b, diff * diff, 0.0)
        part = jnp.sum(sq)  # per-tile scalar partial

        sub = jax.lax.broadcasted_iota(jnp.int32, part_ref.shape, 1)
        lane = jax.lax.broadcasted_iota(jnp.int32, part_ref.shape, 2)
        part_ref[...] = jnp.where((sub == 0) & (lane == 0), part, 0.0)

    return kernel


def classify_net_forward(x, params, y=None, *, tile_b=4096):
    """Pallas implementation of ClassifyNet.forward.

    x: (B, input_size) float32
    params: w1 (input_size,10), b1 (1,10), w2 (10,out_size), b2 (1,out_size)
            (weights stored (in_features, out_features))
    y: optional (B, out_size) targets -> returns scalar MSE loss (F.mse_loss)
    """
    w1, b1, w2, b2 = params["w1"], params["b1"], params["w2"], params["b2"]
    B, D = x.shape
    H = w1.shape[1]
    O = w2.shape[1]

    training = y is not None
    TB, vmem_limit = _pick_tile_and_vmem(B, D, H, O, training, tile_b)
    nb = pl.cdiv(B, TB)

    def resident(shape):
        # constant index_map -> DMA'd once, stays in VMEM across the grid
        return pl.BlockSpec(shape, lambda i: (0, 0))

    common_in_specs = [
        pl.BlockSpec((TB, D), lambda i: (i, 0)),  # x: streamed per batch tile
        resident((D, H)),                          # w1
        resident((1, H)),                          # b1
        resident((H, O)),                          # w2
        resident((1, O)),                          # b2
    ]
    cparams = pltpu.CompilerParams(
        dimension_semantics=("parallel",),
        vmem_limit_bytes=vmem_limit,
    )

    if not training:
        return pl.pallas_call(
            _mlp_fwd_kernel,
            out_shape=jax.ShapeDtypeStruct((B, O), jnp.float32),
            grid=(nb,),
            in_specs=common_in_specs,
            out_specs=pl.BlockSpec((TB, O), lambda i: (i, 0)),
            compiler_params=cparams,
        )(x, w1, b1, w2, b2)

    kernel = _make_mlp_mse_partial_kernel(TB, B)
    partials = pl.pallas_call(
        kernel,
        out_shape=jax.ShapeDtypeStruct((nb, _SUBLANE, _LANE), jnp.float32),
        grid=(nb,),
        in_specs=[common_in_specs[0],
                  pl.BlockSpec((TB, O), lambda i: (i, 0))] + common_in_specs[1:],
        out_specs=pl.BlockSpec((1, _SUBLANE, _LANE), lambda i: (i, 0, 0)),
        compiler_params=cparams,
    )(x, y, w1, b1, w2, b2)
    return jnp.sum(partials) / jnp.float32(B * O)


def init_params(key, input_size, out_size, hidden=10):
    k1, k2, k3, k4 = jax.random.split(key, 4)
    lim1 = 1.0 / jnp.sqrt(input_size)
    lim2 = 1.0 / jnp.sqrt(hidden)
    return {
        # stored already transposed: (in_features, out_features)
        "w1": jax.random.uniform(k1, (input_size, hidden), jnp.float32, -lim1, lim1),
        "b1": jax.random.uniform(k2, (1, hidden), jnp.float32, -lim1, lim1),
        "w2": jax.random.uniform(k3, (hidden, out_size), jnp.float32, -lim2, lim2),
        "b2": jax.random.uniform(k4, (1, out_size), jnp.float32, -lim2, lim2),
    }


if __name__ == "__main__":
    key = jax.random.PRNGKey(0)
    kx, ky, kp = jax.random.split(key, 3)

    batch, input_size, out_size = 8, 32, 4
    x = jax.random.normal(kx, (batch, input_size), jnp.float32)
    y = jax.random.normal(ky, (batch, out_size), jnp.float32)
    params = init_params(kp, input_size, out_size)

    # Inference path (y=None): returns logits / predictions.
    pre = classify_net_forward(x, params)
    jax.block_until_ready(pre)

    # Training path (y given): returns scalar MSE loss (fused into one kernel).
    loss = classify_net_forward(x, params, y)
    jax.block_until_ready(loss)

    # Reference check.
    h_ref = jax.nn.sigmoid(x @ params["w1"] + params["b1"])
    pre_ref = h_ref @ params["w2"] + params["b2"]
    loss_ref = jnp.mean((pre_ref - y) ** 2)
    assert pre.shape == (batch, out_size), "pre shape mismatch"
    assert jnp.allclose(pre, pre_ref, atol=1e-5), "pre mismatch"
    assert jnp.allclose(loss, loss_ref, atol=1e-5), "loss mismatch"

    # Multi-tile + ragged-batch exercise (tile forced small: B=20, TB=8 -> 3 tiles,
    # last tile ragged) to validate the no-padding path.
    xb = jax.random.normal(kx, (20, input_size), jnp.float32)
    yb = jax.random.normal(ky, (20, out_size), jnp.float32)
    pre_b = classify_net_forward(xb, params, tile_b=8)
    loss_b = classify_net_forward(xb, params, yb, tile_b=8)
    jax.block_until_ready((pre_b, loss_b))
    hb_ref = jax.nn.sigmoid(xb @ params["w1"] + params["b1"])
    preb_ref = hb_ref @ params["w2"] + params["b2"]
    lossb_ref = jnp.mean((preb_ref - yb) ** 2)
    assert jnp.allclose(pre_b, preb_ref, atol=1e-5), "ragged pre mismatch"
    assert jnp.allclose(loss_b, lossb_ref, atol=1e-5), "ragged loss mismatch"

    print("KERNEL_OK")
</pallas_src>

<mosaic_0001>
module attributes {stable_mosaic.version = 11 : i64} {
  func.func @_mlp_fwd_kernel(%arg0: i32, %arg1: memref<8x32xf32, #tpu.memory_space<vmem>>, %arg2: memref<32x10xf32, #tpu.memory_space<vmem>>, %arg3: memref<1x10xf32, #tpu.memory_space<vmem>>, %arg4: memref<10x4xf32, #tpu.memory_space<vmem>>, %arg5: memref<1x4xf32, #tpu.memory_space<vmem>>, %arg6: memref<8x4xf32, #tpu.memory_space<vmem>>) attributes {dimension_semantics = [#tpu.dimension_semantics<parallel>], iteration_bounds = array<i64: 1>, scalar_prefetch = 0 : i64, scratch_operands = 0 : i64, tpu.core_type = #tpu.core_type<tc>, window_params = [{transform_indices = @transform_0, window_bounds = array<i64: 8, 32>}, {pipeline_mode = #tpu.pipeline_mode<synchronous>, transform_indices = @transform_1, window_bounds = array<i64: 32, 10>}, {pipeline_mode = #tpu.pipeline_mode<synchronous>, transform_indices = @transform_2, window_bounds = array<i64: 1, 10>}, {pipeline_mode = #tpu.pipeline_mode<synchronous>, transform_indices = @transform_3, window_bounds = array<i64: 10, 4>}, {pipeline_mode = #tpu.pipeline_mode<synchronous>, transform_indices = @transform_4, window_bounds = array<i64: 1, 4>}, {transform_indices = @transform_5, window_bounds = array<i64: 8, 4>}]} {
    %c0 = arith.constant 0 : index
    %c0_0 = arith.constant 0 : index
    %0 = vector.load %arg1[%c0, %c0_0] : memref<8x32xf32, #tpu.memory_space<vmem>>, vector<8x32xf32>
    %c0_1 = arith.constant 0 : index
    %c0_2 = arith.constant 0 : index
    %1 = vector.load %arg2[%c0_1, %c0_2] : memref<32x10xf32, #tpu.memory_space<vmem>>, vector<32x10xf32>
    %cst = arith.constant dense<0.000000e+00> : vector<8x10xf32>
    %2 = tpu.matmul %0, %1, %cst {dimension_numbers = #tpu.dot_dimension_numbers<[1], [0], [0], [1], [0, 0, 1, 1], [], []>} : vector<8x32xf32>, vector<32x10xf32>, vector<8x10xf32> -> vector<8x10xf32>
    %c0_3 = arith.constant 0 : index
    %c0_4 = arith.constant 0 : index
    %3 = vector.load %arg3[%c0_3, %c0_4] : memref<1x10xf32, #tpu.memory_space<vmem>>, vector<1x10xf32>
    %4 = vector.broadcast %3 : vector<1x10xf32> to vector<8x10xf32>
    %5 = arith.addf %2, %4 : vector<8x10xf32>
    %6 = arith.negf %5 : vector<8x10xf32>
    %7 = math.exp %6 : vector<8x10xf32>
    %cst_5 = arith.constant 1.000000e+00 : f32
    %8 = vector.broadcast %cst_5 : f32 to vector<8x10xf32>
    %9 = arith.addf %8, %7 : vector<8x10xf32>
    %10 = arith.divf %8, %9 : vector<8x10xf32>
    %c0_6 = arith.constant 0 : index
    %c0_7 = arith.constant 0 : index
    %11 = vector.load %arg4[%c0_6, %c0_7] : memref<10x4xf32, #tpu.memory_space<vmem>>, vector<10x4xf32>
    %cst_8 = arith.constant dense<0.000000e+00> : vector<8x4xf32>
    %12 = tpu.matmul %10, %11, %cst_8 {dimension_numbers = #tpu.dot_dimension_numbers<[1], [0], [0], [1], [0, 0, 1, 1], [], []>} : vector<8x10xf32>, vector<10x4xf32>, vector<8x4xf32> -> vector<8x4xf32>
    %c0_9 = arith.constant 0 : index
    %c0_10 = arith.constant 0 : index
    %13 = vector.load %arg5[%c0_9, %c0_10] : memref<1x4xf32, #tpu.memory_space<vmem>>, vector<1x4xf32>
    %14 = vector.broadcast %13 : vector<1x4xf32> to vector<8x4xf32>
    %15 = arith.addf %12, %14 : vector<8x4xf32>
    %c0_11 = arith.constant 0 : index
    %c0_12 = arith.constant 0 : index
    %16 = vector.load %arg6[%c0_11, %c0_12] : memref<8x4xf32, #tpu.memory_space<vmem>>, vector<8x4xf32>
    tpu.vector_store %arg6[%c0_11, %c0_12], %15 {strides = array<i32>} : memref<8x4xf32, #tpu.memory_space<vmem>>, vector<8x4xf32>,
    return
  }
  func.func @transform_0(%arg0: i32) -> (i32, i32) {
    %c0_i32 = arith.constant 0 : i32
    %c0_i32_0 = arith.constant 0 : i32
    return %arg0, %c0_i32 : i32, i32
  }
  func.func @transform_1(%arg0: i32) -> (i32, i32) {
    %c0_i32 = arith.constant 0 : i32
    %c0_i32_0 = arith.constant 0 : i32
    %c0_i32_1 = arith.constant 0 : i32
    return %c0_i32, %c0_i32_0 : i32, i32
  }
  func.func @transform_2(%arg0: i32) -> (i32, i32) {
    %c0_i32 = arith.constant 0 : i32
    %c0_i32_0 = arith.constant 0 : i32
    %c0_i32_1 = arith.constant 0 : i32
    return %c0_i32, %c0_i32_0 : i32, i32
  }
  func.func @transform_3(%arg0: i32) -> (i32, i32) {
    %c0_i32 = arith.constant 0 : i32
    %c0_i32_0 = arith.constant 0 : i32
    %c0_i32_1 = arith.constant 0 : i32
    return %c0_i32, %c0_i32_0 : i32, i32
  }
  func.func @transform_4(%arg0: i32) -> (i32, i32) {
    %c0_i32 = arith.constant 0 : i32
    %c0_i32_0 = arith.constant 0 : i32
    %c0_i32_1 = arith.constant 0 : i32
    return %c0_i32, %c0_i32_0 : i32, i32
  }
  func.func @transform_5(%arg0: i32) -> (i32, i32) {
    %c0_i32 = arith.constant 0 : i32
    %c0_i32_0 = arith.constant 0 : i32
    return %arg0, %c0_i32 : i32, i32
  }
}

</mosaic_0001>

<bundles_post_ra>
// kernel: tpu_custom_call.1
= control target key start
LH: loop header
LB: loop body
LE: loop exit
PB: predicated region body
PF: predicated region fallthrough
CT: control target
= control target key end

     0   :  { %v255_v0 = vmov 0.0|0.0   ;;  %vm256_vm0 = vmmov 0   ;;  %v257_v4 = vmov 0.0   ;;  %vm32_vm1 = vcmask 261120   ;;  %s319_s1 = inlined_call_operand.vmem [shape: f32[32,10], index: 1, kind: input, shape index: {}]   ;;  %s320_s0 = inlined_call_operand.vmem [shape: f32[8,32], index: 0, kind: input, shape index: {}]   ;;  %s321_s3 = inlined_call_operand.vmem [shape: f32[10,4], index: 3, kind: input, shape index: {}]   ;;  %s322_s2 = inlined_call_operand.vmem [shape: f32[1,10], index: 2, kind: input, shape index: {}]   ;;  %s323_s4 = inlined_call_operand.vmem [shape: f32[1,4], index: 4, kind: input, shape index: {}]   ;;  %s324_s5 = inlined_call_operand.vmem [shape: f32[8,4], index: 5, kind: output, shape index: {}]  }
   0x1   :  { %237 = vmatprep.subr.bf16.mxu0 %v255_v0  ;;  %v21_v1 = vld [vmem:[%s319_s1] sm:$0xff]  ;;  %v22_v2 = vld [vmem:[%s319_s1 + $0x8] sm:$0xff]  ;;  %v23_v3 = vld [vmem:[%s319_s1 + $0x10] sm:$0xff]  ;;  %227 = vmatprep.mubr.msk.f32.mxu0 %vm256_vm0, %v257_v4  ;;  %vm125_vm2 = vcmask 1041408   ;;  %vm258_vm3 = vmmov 1   ;;  %vm121_vm5 = vcmask 80896  }
   0x2   :  { %v238_v5 = vpack.c.bf16 %v22_v2, %v21_v1  ;;  %v24_v6 = vld [vmem:[%s319_s1 + $0x18] sm:$0xff]  ;;  %243 = vmatprep.subr.bf16.mxu1 %v255_v0  ;;  %234 = vmatprep.mubr.msk.f32.mxu1 %vm256_vm0, %v257_v4  ;;  %v20_v8 = vld [vmem:[%s320_s0] sm:$0xff]  ;;  %v113_v10 = vld [vmem:[%s321_s3 + $0x8] sm:$0x3]  ;;  %vm199_vm6 = vcmask 31744  }
   0x3   :  { %v241_v7 = vpack.c.bf16 %v24_v6, %v23_v3  ;;  %v112_v9 = vld [vmem:[%s321_s3] sm:$0xff]  ;;  %vm245_vm4 = vmpackc.low %vm125_vm2, %vm258_vm3 }
   0x4   :  { %239 = vmatpush3.bf16.msra.mxu0 %v238_v5  ;;  %v244_v11 = vpack.c.bf16 %v113_v10, %v112_v9  ;;  %v205_v12 = vld [vmem:[%s322_s2] ss:$0 sm:$0xff] }
   0x5   :  { %240 = vmatprep.subr.bf16.mxu0 %v255_v0  ;;  %v208_v20 = vld [vmem:[%s323_s4] ss:$0 sm:$0xff] }
   0x6   :  { %246 = vmatpush3.bf16.msk.msra.mxu1 %vm245_vm4, %v244_v11 }
   0x8   :  { %242 = vmatpush3.bf16.msra.mxu0 %v241_v7 }
   0xb   :  { %228 = vmatmul.mubr.msk.f32.vlgmr.msra.gmra.mrb[0].mxu0 %vm32_vm1, %v20_v8 }
  0xde   :  { %v102_v13 = vpop.f32.mrb[0].mxu0 }
  0xdf   :  { %v103_v14 = vadd.f32 %v205_v12, %v102_v13  ;;  %v229_v15 = vpop.f32.mrb[1].mxu0 }
  0xe1   :  { %v207_v16 = vmul.f32 -1.442695, %v103_v14 }
  0xe3   :  { %251 = vpow2.f32 %v207_v16 }
  0xed   :  { %v252_v17 = vpop.eup %251 }
  0xee   :  { %v109_v18 = vadd.f32 1.0, %v252_v17 }
  0xf0   :  { %253 = vrcp.f32 %v109_v18 }
  0xfa   :  { %v254_v19 = vpop.eup %253 }
  0xfb   :  { %235 = vmatmul.mubr.msk.f32.vlgmr.msra.gmra.mrb[0].mxu1 %vm121_vm5, %v254_v19 }
 0x1ce   :  { %v195_v21 = vpop.f32.mrb[0].mxu1 }
 0x1cf   :  { %v196_v22 = vadd.f32 %v208_v20, %v195_v21  ;;  %v236_v23 = vpop.f32.mrb[1].mxu1 }
 0x1d1   :  { %200 = vst.msk [vmem:[%s324_s5] sm:$0xff] %vm199_vm6, %v196_v22 }

</bundles_post_ra>
